<compile_context>
chip_gen: v6e
topology: v6e:2x2x1
jax: 0.10.0
libtpu: 0.0.40
codegen_flags: <defaults>
</compile_context>

<pallas_src>
import jax
import jax.numpy as jnp
from jax.experimental import pallas as pl
from jax.experimental.pallas import tpu as pltpu


_MAX_TILE_LANES = 32768  # beyond this the per-step overhead is fully amortized


def _conv1x1_nchw_kernel(w_ref, x_ref, o_ref):
    # w_ref: (n_classes, C_in)  x_ref: (C_in, HW_tile)  o_ref: (n_classes, HW_tile)
    o_ref[...] = jnp.dot(
        w_ref[...], x_ref[...], preferred_element_type=jnp.float32
    ).astype(o_ref.dtype)


def _vmem_limit_bytes():
    """Generation-aware scoped-VMEM limit (~3/4 of physical VMEM).

    v7x: 64 MiB physical -> 48 MiB; v5e/v6e: 128 MiB -> 96 MiB.  Falls back to
    the conservative v7x number if the hardware query is unavailable.
    """
    phys = 64 * 1024 * 1024
    try:
        info = pltpu.get_tpu_info()
        cap = getattr(info, "vmem_capacity_bytes", None)
        if cap:
            phys = int(cap)
    except Exception:
        pass
    return (phys * 3) // 4


def _pick_hw_tile(hw, c_in, n_classes, elem_bytes, out_bytes, tile_budget):
    """Largest lane-dense (multiple-of-128) HW tile whose double-buffered
    x + out blocks fit within `tile_budget` bytes.

    Prefers tiles that divide HW exactly (every block unmasked); otherwise the
    grid gets one masked partial last block, which is still correct since each
    output column depends only on the matching x column.
    """
    per_lane = 2 * (c_in * elem_bytes + n_classes * out_bytes)  # 2x: double buffer
    max_lanes = max((tile_budget // per_lane) // 128 * 128, 128)

    if hw <= 128:
        # Full extent (block == array dim is exempt from the (8,128) rule).
        return hw

    if hw <= 1024 and per_lane * hw <= tile_budget:
        # Small spatial map: one block per batch element minimizes grid steps
        # in the launch-overhead-dominated regime.
        return hw

    # Large map: biggest candidate that divides HW, fits VMEM, and keeps the
    # per-step DMA rows long (floor of 1024 lanes).
    floor = 1024 if hw >= 1024 else 128
    for cand in (32768, 16384, 8192, 4096, 2048, 1024, 512, 256, 128):
        if cand < floor:
            break
        if cand <= hw and cand <= max_lanes and hw % cand == 0:
            return cand

    # No clean divisor: biggest 128-multiple tile that fits the budget; the
    # pl.cdiv grid gives one masked partial last block.
    tile = min((hw // 128) * 128, max_lanes, _MAX_TILE_LANES)
    return max(tile, 128)


def classify_mlp_forward(x_nchw, weight, *, out_dtype=None):
    """Forward of classify_MLP with conv_ks=1 (1x1 conv, no bias/BN/ReLU).

    Args:
      x_nchw:  (N, C_in, H, W)  — PyTorch NCHW layout (f32 or bf16).
      weight:  (n_classes, C_in, 1, 1) — Conv2d weight (PyTorch layout).
               Cast to the activation dtype (autocast semantics).
      out_dtype: output dtype; defaults to the activation dtype.

    Returns:
      (N, n_classes, H, W) in `out_dtype`.  Accumulation is always f32.
    """
    N, C_in, H, W = x_nchw.shape
    n_classes = weight.shape[0]
    HW = H * W
    if out_dtype is None:
        out_dtype = x_nchw.dtype

    # Free views (no data movement).
    x3 = x_nchw.reshape(N, C_in, HW)
    w2 = weight.reshape(n_classes, C_in).astype(x3.dtype)  # tiny cast (autocast)

    elem_bytes = jnp.dtype(x3.dtype).itemsize
    out_bytes = jnp.dtype(out_dtype).itemsize

    vmem_limit = _vmem_limit_bytes()
    tile_budget = vmem_limit // 2  # leave room for the weight block & internals
    tile_hw = _pick_hw_tile(HW, C_in, n_classes, elem_bytes, out_bytes, tile_budget)

    # v7x megacore: guarantee >= 2 grid steps when a single image would
    # otherwise collapse to a 1x1 grid (one TensorCore idle).
    if N == 1 and HW > 128 and pl.cdiv(HW, tile_hw) < 2:
        half = -(-((HW + 1) // 2) // 128) * 128  # round_up(ceil(HW/2), 128)
        if half < HW:
            tile_hw = max(half, 128)

    grid = (N, pl.cdiv(HW, tile_hw))

    cost = pl.CostEstimate(
        flops=2 * N * HW * C_in * n_classes,
        transcendentals=0,
        bytes_accessed=(N * C_in * HW + n_classes * C_in) * elem_bytes
        + N * n_classes * HW * out_bytes,
    )

    out3 = pl.pallas_call(
        _conv1x1_nchw_kernel,
        out_shape=jax.ShapeDtypeStruct((N, n_classes, HW), out_dtype),
        grid=grid,
        in_specs=[
            # Weight is tiny and resident (constant block index -> fetched once).
            pl.BlockSpec((n_classes, C_in), lambda n, j: (0, 0)),
            # One batch element, full channel extent, lane-dense HW tile.
            pl.BlockSpec((None, C_in, tile_hw), lambda n, j: (n, 0, j)),
        ],
        out_specs=pl.BlockSpec((None, n_classes, tile_hw), lambda n, j: (n, 0, j)),
        compiler_params=pltpu.CompilerParams(
            dimension_semantics=("parallel", "parallel"),
            vmem_limit_bytes=vmem_limit,
        ),
        cost_estimate=cost,
    )(w2, x3)

    return out3.reshape(N, n_classes, H, W)


def init_params(key, in_dim, n_classes):
    """Deterministic Conv2d(in_dim, n_classes, 1, bias=False) weight init
    (kaiming-uniform-style bound, like PyTorch's default)."""
    fan_in = in_dim * 1 * 1
    bound = 1.0 / jnp.sqrt(jnp.float32(fan_in))
    return jax.random.uniform(
        key, (n_classes, in_dim, 1, 1), minval=-bound, maxval=bound,
        dtype=jnp.float32,
    )


def _ref_conv1x1(x_nchw, weight):
    # Pure-JAX reference: same operand dtypes, f32 accumulation.
    xf = x_nchw.astype(jnp.float32)
    wf = weight.reshape(weight.shape[0], weight.shape[1]).astype(jnp.float32)
    return jnp.einsum("nchw,oc->nohw", xf, wf)


def _check(x, weight, **kwargs):
    out = jax.block_until_ready(classify_mlp_forward(x, weight, **kwargs))
    ref = _ref_conv1x1(x, weight.astype(x.dtype))
    assert out.shape == ref.shape, (out.shape, ref.shape)
    assert jnp.allclose(out.astype(jnp.float32), ref, atol=5e-2, rtol=2e-2), (
        "mismatch", float(jnp.max(jnp.abs(out.astype(jnp.float32) - ref))))
    return out


if __name__ == "__main__":
    # Shapes consistent with the module's classifier head:
    #   classify_MLP(in_dim=64, n_classes=1), small spatial maps.
    batch, in_dim, n_classes = 2, 64, 1

    key = jax.random.PRNGKey(0)
    kx1, kx2, kx3, kx4, kw = jax.random.split(key, 5)
    weight = init_params(kw, in_dim, n_classes)

    # 1) Main case: bf16 activations (autocast), HW = 256 (lane-dense tile).
    x1 = jax.random.normal(kx1, (batch, in_dim, 16, 16), dtype=jnp.float32)
    _check(x1.astype(jnp.bfloat16), weight)

    # 2) Tiny odd feature map (HW = 100 < 128: full-extent block).
    x2 = jax.random.normal(kx2, (batch, in_dim, 10, 10), dtype=jnp.bfloat16)
    _check(x2, weight, out_dtype=jnp.float32)

    # 3) Large non-128-multiple map (HW = 1156): 128-multiple tile + masked
    #    partial last block, grid product 2 even with N == 1.
    x3 = jax.random.normal(kx3, (1, in_dim, 34, 34), dtype=jnp.bfloat16)
    _check(x3, weight)

    # 4) Single image, small map (HW = 256): megacore split forces >= 2 steps.
    x4 = jax.random.normal(kx4, (1, in_dim, 16, 16), dtype=jnp.bfloat16)
    _check(x4, weight)

    print("KERNEL_OK")
</pallas_src>

<mosaic_0001>
module attributes {stable_mosaic.version = 11 : i64} {
  func.func @_conv1x1_nchw_kernel(%arg0: i32, %arg1: i32, %arg2: memref<1x64xbf16, #tpu.memory_space<vmem>>, %arg3: memref<1x64x256xbf16, #tpu.memory_space<vmem>>, %arg4: memref<1x1x256xbf16, #tpu.memory_space<vmem>>) attributes {dimension_semantics = [#tpu.dimension_semantics<parallel>, #tpu.dimension_semantics<parallel>], iteration_bounds = array<i64: 2, 1>, scalar_prefetch = 0 : i64, scratch_operands = 0 : i64, tpu.core_type = #tpu.core_type<tc>, window_params = [{pipeline_mode = #tpu.pipeline_mode<synchronous>, transform_indices = @transform_0, window_bounds = array<i64: 1, 64>}, {transform_indices = @transform_1, window_bounds = array<i64: 1, 64, 256>}, {transform_indices = @transform_2, window_bounds = array<i64: 1, 1, 256>}]} {
    %c0 = arith.constant 0 : index
    %c0_0 = arith.constant 0 : index
    %0 = vector.load %arg2[%c0, %c0_0] : memref<1x64xbf16, #tpu.memory_space<vmem>>, vector<1x64xbf16>
    %c0_1 = arith.constant 0 : index
    %c0_2 = arith.constant 0 : index
    %c0_3 = arith.constant 0 : index
    %1 = vector.load %arg3[%c0_1, %c0_2, %c0_3] : memref<1x64x256xbf16, #tpu.memory_space<vmem>>, vector<1x64x256xbf16>
    %2 = vector.shape_cast %1 : vector<1x64x256xbf16> to vector<64x256xbf16>
    %cst = arith.constant dense<0.000000e+00> : vector<1x256xf32>
    %3 = tpu.matmul %0, %2, %cst {dimension_numbers = #tpu.dot_dimension_numbers<[1], [0], [0], [1], [0, 0, 1, 1], [], []>} : vector<1x64xbf16>, vector<64x256xbf16>, vector<1x256xf32> -> vector<1x256xf32>
    %4 = arith.truncf %3 : vector<1x256xf32> to vector<1x256xbf16>
    %c0_4 = arith.constant 0 : index
    %c0_5 = arith.constant 0 : index
    %c0_6 = arith.constant 0 : index
    %5 = vector.load %arg4[%c0_4, %c0_5, %c0_6] : memref<1x1x256xbf16, #tpu.memory_space<vmem>>, vector<1x1x256xbf16>
    %6 = vector.shape_cast %5 : vector<1x1x256xbf16> to vector<1x256xbf16>
    %7 = vector.shape_cast %4 : vector<1x256xbf16> to vector<1x1x256xbf16>
    tpu.vector_store %arg4[%c0_4, %c0_5, %c0_6], %7 {strides = array<i32>} : memref<1x1x256xbf16, #tpu.memory_space<vmem>>, vector<1x1x256xbf16>,
    return
  }
  func.func @transform_0(%arg0: i32, %arg1: i32) -> (i32, i32) {
    %c0_i32 = arith.constant 0 : i32
    %c0_i32_0 = arith.constant 0 : i32
    %c0_i32_1 = arith.constant 0 : i32
    return %c0_i32, %c0_i32_0 : i32, i32
  }
  func.func @transform_1(%arg0: i32, %arg1: i32) -> (i32, i32, i32) {
    %c0_i32 = arith.constant 0 : i32
    %c0_i32_0 = arith.constant 0 : i32
    return %arg0, %c0_i32, %arg1 : i32, i32, i32
  }
  func.func @transform_2(%arg0: i32, %arg1: i32) -> (i32, i32, i32) {
    %c0_i32 = arith.constant 0 : i32
    %c0_i32_0 = arith.constant 0 : i32
    return %arg0, %c0_i32, %arg1 : i32, i32, i32
  }
}

</mosaic_0001>

<bundles_post_ra>
// kernel: tpu_custom_call.1
= control target key start
LH: loop header
LB: loop body
LE: loop exit
PB: predicated region body
PF: predicated region fallthrough
CT: control target
= control target key end

     0   :  { %7 = vsyncpa [#allocation3], 0  ;;  %s788_s0 = inlined_call_operand.hbm [shape: bf16[1,64], index: 0, kind: input, shape index: {}]   ;;  %s789_s1 = inlined_call_operand.hbm [shape: bf16[2,64,256], index: 1, kind: input, shape index: {}]   ;;  %s790_s2 = inlined_call_operand.vmem [shape: bf16[2,1,256], index: 2, kind: output, shape index: {}]  }
   0x1   :  { %8 = vsyncpa [#allocation5], 0 }
   0x2   :  { %10 = vsyncpa [#allocation5 + $0x1], 0  ;;  %s667_s9 = smov 0   ;;  %s669_s10 = smov 0  }
   0x3   :  { %s671_s11 = smov 0   ;;  %s673_s12 = smov 0  }
   0x4   :  { %s675_s13 = smov 0   ;;  %s677_s14 = smov 0  }
   0x5 LB: > { %s429_s15 = sadd.s32 4294967295, %s644_s14   ;;  %s58_s16 = sadd.s32 1, %s632_s11  ;;  %s644_s14 = sphi %s677_s14, %s16_s14   ;;  %s640_s13 = sphi %s675_s13, %s804_s13   ;;  %s636_s12 = sphi %s673_s12, %s803_s12   ;;  %s632_s11 = sphi %s671_s11, %s802_s11   ;;  %s628_s10 = sphi %s669_s10, %s801_s10   ;;  %s624_s9 = sphi %s667_s9, %s800_s9  }
   0x6   : > { %p65_p0 = scmp.ne.s32.totalorder %s632_s11, %s628_s10  ;;  %p66_p1 = scmp.eq.s32.totalorder %s644_s14, 0 }
   0x7   : > { %p71_p2 = scmp.ne.s32.totalorder %s628_s10, %s624_s9  ;;  %p701_p3 = scmp.eq.s32.totalorder %s429_s15, 0 }
   0x8   : > { %p67_p4 = por %p66_p1, %p65_p0  ;;  %p431_p5 = scmp.ge.s32.totalorder %s644_s14, 1 }
   0x9   : > { %p708_p6 = por %p701_p3, %p71_p2  ;;  %p110_p7 = scmp.lt.s32.totalorder %s644_s14, 3 }
   0xa   : > { %s646_s20 = smov [#allocation2]   ;;  %p469_p10 = scmp.lt.s32.totalorder %s644_s14, 2 }
   0xb   : > { %s794_s18 = scalar_select %p708_p6, 1, 0 }
   0xc   : > { %p713_p8 = pnand %p431_p5, %p110_p7  ;;  %s123_s21 = sshll.u32 %s646_s20, 4  ;;  %s124_s21 = int_to_ptr.vmem [resolvable:$true] %s123_s21 }
   0xd   : > { %s134_s22 = sand.u32 1, %s632_s11   ;;  %p723_p12 = pnand %p469_p10, %p67_p4 }
   0xe   : > { %s795_s19 = scalar_select %p713_p8, 1, 0 }
   0xf   : > { %p460_p9 = pneg %p713_p8  ;;  %s547_s24 = scalar_lea.vmem %s124_s21, 16 }
  0x10   : > { %p548_p0 = scmp.ne.s32.totalorder %s124_s21, %s547_s24  ;;  %s554_s25 = scalar_lea.vmem %s124_s21, 32 }
  0x11   : > { %p461_p11 = pnand %p460_p9, %p701_p3  ;;  %p555_p5 = scmp.lt.s32.totalorder %s124_s21, %s124_s21 }
  0x12   : > { %p556_p7 = scmp.lt.s32.totalorder %s554_s25, %s547_s24 }
  0x13   : > { %p538_p13 = pneg %p461_p11 }
  0x14   : > { %p557_p6 = por %p556_p7, %p555_p5 }
  0x15   : > { %p550_p1 = pnand %p548_p0, %p538_p13 }
  0x17   : > { %p551_p2 = pneg %p550_p1 }
  0x19   : > { %p558_p8 = pnand %p557_p6, %p551_p2 }
  0x1b   : > { %561 = shalt.err (!%p558_p8)
}
  0x1c   : > { %463 = dma.hbm_to_vmem [thread:$0]  (!%p461_p11), %s788_s0, 16, %s124_s21, [#allocation3]  }
  0x1d   : > { %s28_s28 = sadd.s32 1, %s640_s13  ;;  %s434_s29 = sshll.u32 %s134_s22, 6 }
  0x1e   : > { %p30_p4 = scmp.ge.s32.totalorder %s28_s28, 2  ;;  %s453_s30 = sshll.u32 %s640_s13, 10 }
  0x1f   : > { %s138_s3 = scalar_lea.vmem [#allocation4], %s434_s29  ;;  %s146_s7 = scalar_lea.hbm %s789_s1, %s453_s30 }
  0x20   : > { %s147_s4 = sshll.u32 %s138_s3, 4  ;;  %s806_s28 = smov (%p30_p4, %s28_s28), 0  ;;  %s148_s4 = int_to_ptr.vmem [resolvable:$true] %s147_s4 }
  0x21   : > { %s53_s8 = ssub.s32 %s640_s13, %s806_s28  ;;  %s135_s15 = scalar_lea.sflag [#allocation5], %s134_s22 }
  0x22   : > { %p739_p6 = scmp.eq.s32.totalorder %s53_s8, 0  ;;  %p564_p8 = pneg %p723_p12 }
  0x23   : > { %s575_s20 = scalar_lea.vmem %s148_s4, 1024  ;;  %s647_s21 = smov [#allocation4]  }
  0x24   : > { %p576_p9 = scmp.ne.s32.totalorder %s148_s4, %s575_s20  ;;  %s580_s24 = sshll.u32 %s647_s21, 4  ;;  %s581_s24 = int_to_ptr.vmem [resolvable:$false] %s580_s24 }
  0x25   : > { %s582_s25 = scalar_lea.vmem %s581_s24, 2048  ;;  %p583_p13 = scmp.lt.s32.totalorder %s148_s4, %s581_s24 }
  0x26   : > { %p578_p10 = pnand %p576_p9, %p564_p8  ;;  %p584_p0 = scmp.lt.s32.totalorder %s582_s25, %s575_s20 }
  0x28   : > { %p579_p11 = pneg %p578_p10  ;;  %p585_p1 = por %p584_p0, %p583_p13 }
  0x2a   : > { %p586_p2 = pnand %p585_p1, %p579_p11 }
  0x2c   : > { %589 = shalt.err (!%p586_p2)
}
  0x2d   : > { %s648_s26 = smov 128   ;;  %s649_s22 = smov 8  }
  0x2e   : > { %467 = dma.hbm_to_vmem [thread:$0]  (!%p723_p12), %s146_s7, 1024, %s148_s4, %s135_s15, %s648_s26, %s648_s26, %s649_s22  }
  0x2f   : > { %s752_s27 = scalar_select %p739_p6, %s632_s11, %s58_s16  }
  0x30   : > { %p798_p5 = scmp.ne.s32.totalorder %s795_s19, 0 }
  0x32   : > { %159 = sbr.rel (%p798_p5) target bundleno = 280 (0x118), region = 28 }
  0x37   : > { %615 = dma.done.wait (%p701_p3), [#allocation3], 16  }
  0x38   : > { %617 = vsyncadd (%p701_p3), [#allocation3], 4294967280  ;;  %s165_s29 = sand.u32 1, %s628_s10   ;;  %p799_p12 = scmp.ne.s32.totalorder %s794_s18, 0 }
  0x39   : > { %s439_s30 = sshll.u32 %s165_s29, 6  ;;  %s166_s3 = scalar_lea.sflag [#allocation5], %s165_s29 }
  0x3a   : > { %s169_s23 = scalar_lea.vmem [#allocation4], %s439_s30 }
  0x3b   : > { %619 = dma.done.wait (%p799_p12), %s166_s3, 1024  }
  0x3c   : > { %621 = vsyncadd (%p799_p12), %s166_s3, 4294966272  ;;  %v650_v0 = vmov 0   ;;  %v524_v1 = vld [vmem:[%s169_s23 + $0x34] ss:$8 sps:$4 sm:$0xff]   ;;  %v526_v2 = vld [vmem:[%s169_s23 + $0x30] ss:$8 sps:$4 sm:$0xff]   ;;  %v306_v12 = vlaneseq }
  0x3d   : > { %289 = vmatprep.mubr.bf16.mxu0 %v650_v0  ;;  %265 = vmatprep.subr.bf16.mxu0 %v524_v1  ;;  %v527_v3 = vld [vmem:[%s169_s23 + $0x24] ss:$8 sps:$4 sm:$0xff]   ;;  %v529_v4 = vld [vmem:[%s169_s23 + $0x20] ss:$8 sps:$4 sm:$0xff]   ;;  %v530_v5 = vld [vmem:[%s169_s23 + $0x14] ss:$8 sps:$4 sm:$0xff]  }
  0x3e   : > { %266 = vmatpush1.bf16.msra.mxu0 %v526_v2  ;;  %v532_v6 = vld [vmem:[%s169_s23 + $0x10] ss:$8 sps:$4 sm:$0xff]   ;;  %v533_v7 = vld [vmem:[%s169_s23 + $0x4] ss:$8 sps:$4 sm:$0xff]   ;;  %v535_v8 = vld [vmem:[%s169_s23] ss:$8 sps:$4 sm:$0xff]  }
  0x3f   : > { %267 = vmatprep.subr.bf16.mxu0 %v527_v3  ;;  %v204_v9 = vld [vmem:[#allocation2] sm:$0x1]  ;;  %vm253_vm0 = vcmask 523264   ;;  %p195_p3 = scmp.lt.s32.totalorder %s636_s12, 1  ;;  %v651_v10 = vmov 1966171168  }
  0x40   : > { %v304_v11 = vunpack.c.l.s4 %v651_v10  ;;  %v307_v14 = vshrl.u32 %v306_v12, 7  ;;  %vm318_vm1 = vcmask 1040384   ;;  %vm319_vm2 = vsmask.f32 256 }
  0x41   : > { %s808_s12 = smov (!%p195_p3, %s636_s12), 1  ;;  %vm321_vm3 = vcmask 1041409   ;;  %vm322_vm4 = vsmask.f32 1280  ;;  %vm320_vm5 = vmand %vm318_vm1, %vm319_vm2 }
  0x42   : > { %268 = vmatpush1.bf16.msra.mxu0 %v529_v4  ;;  %v305_v13 = vunpack.c.0.s8 %v304_v11  ;;  %s440_s16 = sshll.u32 %s808_s12, 1  ;;  %vm323_vm6 = vmand %vm321_vm3, %vm322_vm4 }
  0x43   : > { %269 = vmatprep.subr.bf16.mxu0 %v530_v5  ;;  %s201_s19 = scalar_lea.vmem %s790_s2, %s440_s16  ;;  %vm324_vm7 = vmor %vm323_vm6, %vm320_vm5 }
  0x44   : > { %v308_v16 = vsub.s32 %v305_v13, %v307_v14  ;;  %v325_v21 = vld [vmem:[%s201_s19] sm:$0x3] }
  0x46   : > { %270 = vmatpush1.bf16.msra.mxu0 %v532_v6 }
  0x47   : > { %271 = vmatprep.subr.bf16.mxu0 %v533_v7 }
  0x4a   : > { %272 = vmatpush1.bf16.msra.mxu0 %v535_v8 }
  0x4d   : > { %449 = vmatmul.mubr.msk.bf16.vlgmr.msra.gmra.mxu0 %vm253_vm0, %v204_v9 }
 0x10d   : > { %v291_v15 = vpop.f32.mrf.mxu0 }
 0x10f   : > { %v293_v17 = vpop.f32.mrf.mxu0 }
 0x110   : > { %v450_v18 = vpack.c.bf16 %v293_v17, %v291_v15 }
 0x111   : > { %v295_v19 = vpop.f32.mrf.mxu0 }
 0x112   : > { %v309_v20 = vrot.slane %v450_v18, %v308_v16 }
 0x113   : > { %v296_v22 = vpop.f32.mrf.mxu0 }
 0x114   : > { %v316_v23 = vrot.slane %v309_v20, %v308_v16 }
 0x116   : > { %v326_v24 = vsel %vm324_vm7, %v316_v23, %v325_v21 }
 0x117   : > { %327 = vst [vmem:[%s201_s19] sm:$0x3] %v326_v24 }
 0x118 PF: > { %s16_s14 = sadd.s32 1, %s644_s14   ;;  %s800_s9 = smov %s628_s10 }
 0x119   : > { %p13_p7 = scmp.ge.s32.totalorder %s16_s14, 4   ;;  %s801_s10 = smov %s632_s11 }
 0x11a   : > { %s802_s11 = smov %s752_s27  ;;  %s803_s12 = smov %s640_s13 }
 0x11b   : > { %s804_s13 = smov %s806_s28  ;;  %15 = sbr.rel (!%p13_p7) target bundleno = 5 (0x5), region = 73 }
 0x120   :  { %356 = vsyncpa [#allocation3], 1 }
 0x121   :  { %358 = vsyncpa [#allocation3 + $0x1], 1 }
 0x122   :  { %359 = vsyncpa [#allocation5], 1 }
 0x123   :  { %361 = vsyncpa [#allocation5 + $0x1], 1 }

</bundles_post_ra>
